<compile_context>
chip_gen: v7x
topology: tpu7x:2x2x1
jax: 0.10.0
libtpu: 0.0.40
codegen_flags: <defaults>
</compile_context>

<pallas_src>
import jax
import jax.numpy as jnp
from jax.experimental import pallas as pl
from jax.experimental.pallas import tpu as pltpu

# Real (PyTorch) layer widths and their lane-padded (multiple-of-128) widths.
D_IN = 1
H1, H2, H3 = 200, 400, 150
H1P, H2P, H3P = 256, 512, 256


def _round_up(x, m):
    return ((x + m - 1) // m) * m


def mlp_kernel(x_ref,
               w1_ref, b1_ref,
               w2_ref, b2_ref,
               w3_ref, b3_ref,
               w4_ref, b4_ref,
               o_ref):
    x = x_ref[...]                                                  # (TB, 1) f32

    # Layer 1: in_features == 1 -> outer product on the VPU (no MXU pass).
    h1 = jnp.maximum(x * w1_ref[...] + b1_ref[...], 0.0)           # (TB, H1P) f32

    # Layers 2 & 3: bf16 x bf16 matmuls on the MXU, f32 accumulation.
    h2 = jnp.dot(h1.astype(jnp.bfloat16), w2_ref[...],
                 preferred_element_type=jnp.float32) + b2_ref[...]
    h2 = jnp.maximum(h2, 0.0)                                       # (TB, H2P) f32

    h3 = jnp.dot(h2.astype(jnp.bfloat16), w3_ref[...],
                 preferred_element_type=jnp.float32) + b3_ref[...]
    h3 = jnp.maximum(h3, 0.0)                                       # (TB, H3P) f32

    # Layer 4: out_features == 1 -> VPU multiply + lane (XLU) reduction.
    logits = jnp.sum(h3 * w4_ref[...], axis=-1, keepdims=True) + b4_ref[...]

    # Sigmoid: exp + approximate reciprocal, both on the (otherwise idle) EUP.
    o_ref[...] = (pl.reciprocal(1.0 + jnp.exp(-logits), approx=True)
                  ).astype(o_ref.dtype)


def mlp_forward(x, params, *, batch_tile=2048):
    """x: (B, 1) float32 -> (B, 1) float32."""
    w1, b1, w2, b2, w3, b3, w4, b4 = params
    B = x.shape[0]

    # Batch padded to a sublane multiple; large batches use a tile that is a
    # multiple of 256 (MXU M fill) and leaves >= 2 grid steps (v7x megacore).
    bp = _round_up(B, 8)
    if bp <= batch_tile:
        tb = bp
    else:
        tb = min(_round_up(batch_tile, 256), _round_up(pl.cdiv(bp, 2), 256))
        bp = _round_up(bp, tb)
    if bp != B:
        x = jnp.pad(x, ((0, bp - B), (0, 0)))

    # Weights/biases: same block every grid step -> resident in VMEM.
    resident = lambda a: pl.BlockSpec(a.shape, lambda i: (0,) * a.ndim)

    out = pl.pallas_call(
        mlp_kernel,
        out_shape=jax.ShapeDtypeStruct((bp, 1), jnp.float32),
        grid=(bp // tb,),
        in_specs=[pl.BlockSpec((tb, 1), lambda i: (i, 0)),
                  resident(w1), resident(b1),
                  resident(w2), resident(b2),
                  resident(w3), resident(b3),
                  resident(w4), resident(b4)],
        out_specs=pl.BlockSpec((tb, 1), lambda i: (i, 0)),
        compiler_params=pltpu.CompilerParams(
            dimension_semantics=("parallel",)),
    )(x, w1, b1, w2, b2, w3, b3, w4, b4)
    return out[:B]


def init_params(key):
    """PyTorch nn.Linear-style init (U(-1/sqrt(fan_in), 1/sqrt(fan_in))) on the
    REAL layer shapes, then zero-padded to lane multiples.  Weights are stored
    as (in, out) so the kernel computes y = x @ W + b (== PyTorch x @ W.T + b).
    w2/w3 are stored in bf16 (MXU-native operands, half the weight DMA);
    w4 is a (1, H3P) row since the kernel reduces it on the VPU/XLU.
    """
    real = [(D_IN, H1), (H1, H2), (H2, H3), (H3, 1)]
    padded = [(D_IN, H1P), (H1P, H2P), (H2P, H3P), (H3P, 1)]
    keys = jax.random.split(key, 2 * len(real))

    ws, bs = [], []
    for i, ((fi, fo), (pi, po)) in enumerate(zip(real, padded)):
        bound = 1.0 / jnp.sqrt(jnp.float32(fi))
        w = jax.random.uniform(keys[2 * i], (fi, fo),
                               minval=-bound, maxval=bound, dtype=jnp.float32)
        b = jax.random.uniform(keys[2 * i + 1], (1, fo),
                               minval=-bound, maxval=bound, dtype=jnp.float32)
        ws.append(jnp.pad(w, ((0, pi - fi), (0, po - fo))))
        bs.append(jnp.pad(b, ((0, 0), (0, po - fo))))

    w1, w2, w3, w4 = ws
    b1, b2, b3, b4 = bs
    w4 = w4.T                                   # (1, H3P) row for the reduction
    w2 = w2.astype(jnp.bfloat16)                # bf16 MXU operands
    w3 = w3.astype(jnp.bfloat16)
    return (w1, b1, w2, b2, w3, b3, w4, b4)


def reference_forward(x, params):
    """Pure-JAX reference with matching numerics (bf16 matmul operands,
    f32 accumulation); only the approximate sigmoid reciprocal differs."""
    w1, b1, w2, b2, w3, b3, w4, b4 = params
    h = jnp.maximum(x @ w1 + b1, 0.0)
    h = jnp.maximum(
        jnp.dot(h.astype(jnp.bfloat16), w2,
                preferred_element_type=jnp.float32) + b2, 0.0)
    h = jnp.maximum(
        jnp.dot(h.astype(jnp.bfloat16), w3,
                preferred_element_type=jnp.float32) + b3, 0.0)
    z = h @ w4.T + b4
    return 1.0 / (1.0 + jnp.exp(-z))


if __name__ == "__main__":
    key = jax.random.PRNGKey(0)
    k_x, k_p = jax.random.split(key)

    B = 8
    x = jax.random.normal(k_x, (B, 1), dtype=jnp.float32)
    params = init_params(k_p)

    out = jax.block_until_ready(mlp_forward(x, params))
    ref = reference_forward(x, params)

    assert out.shape == (B, 1)
    # approx reciprocal in the sigmoid -> slightly relaxed tolerance.
    assert jnp.allclose(out, ref, atol=1e-2, rtol=1e-2), \
        float(jnp.max(jnp.abs(out - ref)))

    print("KERNEL_OK")
</pallas_src>

<mosaic_0001>
module attributes {stable_mosaic.version = 11 : i64} {
  func.func @mlp_kernel(%arg0: i32, %arg1: memref<8x1xf32, #tpu.memory_space<vmem>>, %arg2: memref<1x256xf32, #tpu.memory_space<vmem>>, %arg3: memref<1x256xf32, #tpu.memory_space<vmem>>, %arg4: memref<256x512xbf16, #tpu.memory_space<vmem>>, %arg5: memref<1x512xf32, #tpu.memory_space<vmem>>, %arg6: memref<512x256xbf16, #tpu.memory_space<vmem>>, %arg7: memref<1x256xf32, #tpu.memory_space<vmem>>, %arg8: memref<1x256xf32, #tpu.memory_space<vmem>>, %arg9: memref<1x1xf32, #tpu.memory_space<vmem>>, %arg10: memref<8x1xf32, #tpu.memory_space<vmem>>) attributes {dimension_semantics = [#tpu.dimension_semantics<parallel>], iteration_bounds = array<i64: 1>, scalar_prefetch = 0 : i64, scratch_operands = 0 : i64, tpu.core_type = #tpu.core_type<tc>, window_params = [{transform_indices = @transform_0, window_bounds = array<i64: 8, 1>}, {pipeline_mode = #tpu.pipeline_mode<synchronous>, transform_indices = @transform_1, window_bounds = array<i64: 1, 256>}, {pipeline_mode = #tpu.pipeline_mode<synchronous>, transform_indices = @transform_2, window_bounds = array<i64: 1, 256>}, {pipeline_mode = #tpu.pipeline_mode<synchronous>, transform_indices = @transform_3, window_bounds = array<i64: 256, 512>}, {pipeline_mode = #tpu.pipeline_mode<synchronous>, transform_indices = @transform_4, window_bounds = array<i64: 1, 512>}, {pipeline_mode = #tpu.pipeline_mode<synchronous>, transform_indices = @transform_5, window_bounds = array<i64: 512, 256>}, {pipeline_mode = #tpu.pipeline_mode<synchronous>, transform_indices = @transform_6, window_bounds = array<i64: 1, 256>}, {pipeline_mode = #tpu.pipeline_mode<synchronous>, transform_indices = @transform_7, window_bounds = array<i64: 1, 256>}, {pipeline_mode = #tpu.pipeline_mode<synchronous>, transform_indices = @transform_8, window_bounds = array<i64: 1, 1>}, {transform_indices = @transform_9, window_bounds = array<i64: 8, 1>}]} {
    %c0 = arith.constant 0 : index
    %c0_0 = arith.constant 0 : index
    %0 = vector.load %arg1[%c0, %c0_0] : memref<8x1xf32, #tpu.memory_space<vmem>>, vector<8x1xf32>
    %c0_1 = arith.constant 0 : index
    %c0_2 = arith.constant 0 : index
    %1 = vector.load %arg2[%c0_1, %c0_2] : memref<1x256xf32, #tpu.memory_space<vmem>>, vector<1x256xf32>
    %2 = vector.broadcast %0 : vector<8x1xf32> to vector<8x256xf32>
    %3 = vector.broadcast %1 : vector<1x256xf32> to vector<8x256xf32>
    %4 = arith.mulf %2, %3 : vector<8x256xf32>
    %c0_3 = arith.constant 0 : index
    %c0_4 = arith.constant 0 : index
    %5 = vector.load %arg3[%c0_3, %c0_4] : memref<1x256xf32, #tpu.memory_space<vmem>>, vector<1x256xf32>
    %6 = vector.broadcast %5 : vector<1x256xf32> to vector<8x256xf32>
    %7 = arith.addf %4, %6 : vector<8x256xf32>
    %cst = arith.constant 0.000000e+00 : f32
    %8 = vector.broadcast %cst : f32 to vector<8x256xf32>
    %9 = arith.maximumf %7, %8 : vector<8x256xf32>
    %10 = arith.truncf %9 : vector<8x256xf32> to vector<8x256xbf16>
    %c0_5 = arith.constant 0 : index
    %c0_6 = arith.constant 0 : index
    %11 = vector.load %arg4[%c0_5, %c0_6] : memref<256x512xbf16, #tpu.memory_space<vmem>>, vector<256x512xbf16>
    %cst_7 = arith.constant dense<0.000000e+00> : vector<8x512xf32>
    %12 = tpu.matmul %10, %11, %cst_7 {dimension_numbers = #tpu.dot_dimension_numbers<[1], [0], [0], [1], [0, 0, 1, 1], [], []>} : vector<8x256xbf16>, vector<256x512xbf16>, vector<8x512xf32> -> vector<8x512xf32>
    %c0_8 = arith.constant 0 : index
    %c0_9 = arith.constant 0 : index
    %13 = vector.load %arg5[%c0_8, %c0_9] : memref<1x512xf32, #tpu.memory_space<vmem>>, vector<1x512xf32>
    %14 = vector.broadcast %13 : vector<1x512xf32> to vector<8x512xf32>
    %15 = arith.addf %12, %14 : vector<8x512xf32>
    %cst_10 = arith.constant 0.000000e+00 : f32
    %16 = vector.broadcast %cst_10 : f32 to vector<8x512xf32>
    %17 = arith.maximumf %15, %16 : vector<8x512xf32>
    %18 = arith.truncf %17 : vector<8x512xf32> to vector<8x512xbf16>
    %c0_11 = arith.constant 0 : index
    %c0_12 = arith.constant 0 : index
    %19 = vector.load %arg6[%c0_11, %c0_12] : memref<512x256xbf16, #tpu.memory_space<vmem>>, vector<512x256xbf16>
    %cst_13 = arith.constant dense<0.000000e+00> : vector<8x256xf32>
    %20 = tpu.matmul %18, %19, %cst_13 {dimension_numbers = #tpu.dot_dimension_numbers<[1], [0], [0], [1], [0, 0, 1, 1], [], []>} : vector<8x512xbf16>, vector<512x256xbf16>, vector<8x256xf32> -> vector<8x256xf32>
    %c0_14 = arith.constant 0 : index
    %c0_15 = arith.constant 0 : index
    %21 = vector.load %arg7[%c0_14, %c0_15] : memref<1x256xf32, #tpu.memory_space<vmem>>, vector<1x256xf32>
    %22 = vector.broadcast %21 : vector<1x256xf32> to vector<8x256xf32>
    %23 = arith.addf %20, %22 : vector<8x256xf32>
    %cst_16 = arith.constant 0.000000e+00 : f32
    %24 = vector.broadcast %cst_16 : f32 to vector<8x256xf32>
    %25 = arith.maximumf %23, %24 : vector<8x256xf32>
    %c0_17 = arith.constant 0 : index
    %c0_18 = arith.constant 0 : index
    %26 = vector.load %arg8[%c0_17, %c0_18] : memref<1x256xf32, #tpu.memory_space<vmem>>, vector<1x256xf32>
    %27 = vector.broadcast %26 : vector<1x256xf32> to vector<8x256xf32>
    %28 = arith.mulf %25, %27 : vector<8x256xf32>
    %cst_19 = arith.constant dense<0.000000e+00> : vector<8xf32>
    %29 = vector.multi_reduction <add>, %28, %cst_19 [1] : vector<8x256xf32> to vector<8xf32>
    %30 = vector.shape_cast %29 : vector<8xf32> to vector<8x1xf32>
    %c0_20 = arith.constant 0 : index
    %c0_21 = arith.constant 0 : index
    %31 = vector.load %arg9[%c0_20, %c0_21] : memref<1x1xf32, #tpu.memory_space<vmem>>, vector<1x1xf32>
    %32 = vector.broadcast %31 : vector<1x1xf32> to vector<8x1xf32>
    %33 = arith.addf %30, %32 : vector<8x1xf32>
    %cst_22 = arith.constant 0.000000e+00 : f32
    %34 = vector.broadcast %cst_22 : f32 to vector<8x1xf32>
    %35 = arith.subf %34, %33 : vector<8x1xf32>
    %36 = math.exp %35 : vector<8x1xf32>
    %cst_23 = arith.constant 1.000000e+00 : f32
    %37 = vector.broadcast %cst_23 : f32 to vector<8x1xf32>
    %38 = arith.addf %37, %36 : vector<8x1xf32>
    %39 = tpu.reciprocal %38 {approx = true} : vector<8x1xf32> -> vector<8x1xf32>
    %c0_24 = arith.constant 0 : index
    %c0_25 = arith.constant 0 : index
    %40 = vector.load %arg10[%c0_24, %c0_25] : memref<8x1xf32, #tpu.memory_space<vmem>>, vector<8x1xf32>
    tpu.vector_store %arg10[%c0_24, %c0_25], %39 {strides = array<i32>} : memref<8x1xf32, #tpu.memory_space<vmem>>, vector<8x1xf32>,
    return
  }
  func.func @transform_0(%arg0: i32) -> (i32, i32) {
    %c0_i32 = arith.constant 0 : i32
    %c0_i32_0 = arith.constant 0 : i32
    return %arg0, %c0_i32 : i32, i32
  }
  func.func @transform_1(%arg0: i32) -> (i32, i32) {
    %c0_i32 = arith.constant 0 : i32
    %c0_i32_0 = arith.constant 0 : i32
    %c0_i32_1 = arith.constant 0 : i32
    return %c0_i32, %c0_i32_0 : i32, i32
  }
  func.func @transform_2(%arg0: i32) -> (i32, i32) {
    %c0_i32 = arith.constant 0 : i32
    %c0_i32_0 = arith.constant 0 : i32
    %c0_i32_1 = arith.constant 0 : i32
    return %c0_i32, %c0_i32_0 : i32, i32
  }
  func.func @transform_3(%arg0: i32) -> (i32, i32) {
    %c0_i32 = arith.constant 0 : i32
    %c0_i32_0 = arith.constant 0 : i32
    %c0_i32_1 = arith.constant 0 : i32
    return %c0_i32, %c0_i32_0 : i32, i32
  }
  func.func @transform_4(%arg0: i32) -> (i32, i32) {
    %c0_i32 = arith.constant 0 : i32
    %c0_i32_0 = arith.constant 0 : i32
    %c0_i32_1 = arith.constant 0 : i32
    return %c0_i32, %c0_i32_0 : i32, i32
  }
  func.func @transform_5(%arg0: i32) -> (i32, i32) {
    %c0_i32 = arith.constant 0 : i32
    %c0_i32_0 = arith.constant 0 : i32
    %c0_i32_1 = arith.constant 0 : i32
    return %c0_i32, %c0_i32_0 : i32, i32
  }
  func.func @transform_6(%arg0: i32) -> (i32, i32) {
    %c0_i32 = arith.constant 0 : i32
    %c0_i32_0 = arith.constant 0 : i32
    %c0_i32_1 = arith.constant 0 : i32
    return %c0_i32, %c0_i32_0 : i32, i32
  }
  func.func @transform_7(%arg0: i32) -> (i32, i32) {
    %c0_i32 = arith.constant 0 : i32
    %c0_i32_0 = arith.constant 0 : i32
    %c0_i32_1 = arith.constant 0 : i32
    return %c0_i32, %c0_i32_0 : i32, i32
  }
  func.func @transform_8(%arg0: i32) -> (i32, i32) {
    %c0_i32 = arith.constant 0 : i32
    %c0_i32_0 = arith.constant 0 : i32
    %c0_i32_1 = arith.constant 0 : i32
    return %c0_i32, %c0_i32_0 : i32, i32
  }
  func.func @transform_9(%arg0: i32) -> (i32, i32) {
    %c0_i32 = arith.constant 0 : i32
    %c0_i32_0 = arith.constant 0 : i32
    return %arg0, %c0_i32 : i32, i32
  }
}

</mosaic_0001>

<bundles_post_ra>
// kernel: tpu_custom_call.1
= control target key start
LH: loop header
LB: loop body
LE: loop exit
PB: predicated region body
PF: predicated region fallthrough
CT: control target
= control target key end

     0   :  { %s1636_s0 = inlined_call_operand.vmem [shape: f32[8,1], index: 0, kind: input, shape index: {}]   ;;  %s1637_s1 = inlined_call_operand.vmem [shape: f32[1,256], index: 1, kind: input, shape index: {}]   ;;  %s1638_s2 = inlined_call_operand.vmem [shape: f32[1,256], index: 2, kind: input, shape index: {}]   ;;  %s1639_s3 = inlined_call_operand.hbm [shape: bf16[256,512], index: 3, kind: input, shape index: {}]   ;;  %s1640_s4 = inlined_call_operand.vmem [shape: f32[1,512], index: 4, kind: input, shape index: {}]   ;;  %s1641_s5 = inlined_call_operand.hbm [shape: bf16[512,256], index: 5, kind: input, shape index: {}]   ;;  %s1642_s6 = inlined_call_operand.vmem [shape: f32[1,256], index: 6, kind: input, shape index: {}]   ;;  %s1643_s7 = inlined_call_operand.vmem [shape: f32[1,256], index: 7, kind: input, shape index: {}]   ;;  %s1644_s8 = inlined_call_operand.<no memory space> [shape: f32[1,1], index: 8, kind: input, shape index: {}]   ;;  %s1645_s9 = inlined_call_operand.vmem [shape: f32[8,1], index: 9, kind: output, shape index: {}]  }
   0x1   :  { %v14_v0 = vstv %s1644_s8 }
   0x2   :  { %15 = vst [vmem:[#allocation2] sm:$0x1] %v14_v0 }
   0x3   :  { %16 = vsyncpa [#allocation4], 0 }
   0x4   :  { %17 = vsyncpa [#allocation6], 0  ;;  %s1501_s11 = smov [#allocation3]   ;;  %s1453_s15 = scalar_lea.hbm %s1639_s3, 8192 }
   0x5   :  { %s29_s12 = sshll.u32 %s1501_s11, 4  ;;  %p1454_p0 = scmp.ne.s32.totalorder %s1639_s3, %s1453_s15  ;;  %s30_s12 = int_to_ptr.vmem [resolvable:$true] %s29_s12 }
   0x6   :  { %p1457_p1 = scmp.lt.u32.totalorder %s1453_s15, %s1639_s3 }
   0x8   :  { %p1459_p2 = pnand %p1457_p1, %p1454_p0 }
   0xa   :  { %1462 = shalt.err (!%p1459_p2)
}
   0xb   :  { %s1463_s8 = scalar_lea.vmem %s30_s12, 8192  ;;  %p1468_p4 = scmp.lt.s32.totalorder %s30_s12, %s30_s12 }
   0xc   :  { %p1464_p3 = scmp.ne.s32.totalorder %s30_s12, %s1463_s8  ;;  %p1469_p5 = scmp.lt.s32.totalorder %s1463_s8, %s1463_s8 }
   0xe   :  { %p1470_p6 = por %p1469_p5, %p1468_p4 }
  0x10   :  { %p1471_p7 = pnand %p1470_p6, %p1464_p3 }
  0x12   :  { %1474 = shalt.err (!%p1471_p7)
}
  0x13   :  { %s1502_s20 = smov 256   ;;  %s1503_s21 = smov 16  }
  0x14   :  { %35 = dma.hbm_to_vmem [thread:$0]  %s1639_s3, 8192, %s30_s12, [#allocation4], %s1502_s20, %s1502_s20, %s1503_s21  }
  0x15   :  { %s1504_s24 = smov [#allocation5]   ;;  %s1475_s28 = scalar_lea.hbm %s1641_s5, 8192 }
  0x16   :  { %s43_s25 = sshll.u32 %s1504_s24, 4  ;;  %p1476_p8 = scmp.ne.s32.totalorder %s1641_s5, %s1475_s28  ;;  %s44_s25 = int_to_ptr.vmem [resolvable:$true] %s43_s25 }
  0x17   :  { %p1479_p9 = scmp.lt.u32.totalorder %s1475_s28, %s1641_s5 }
  0x19   :  { %p1481_p10 = pnand %p1479_p9, %p1476_p8 }
  0x1b   :  { %1484 = shalt.err (!%p1481_p10)
}
  0x1c   :  { %s1485_s13 = scalar_lea.vmem %s44_s25, 8192  ;;  %p1490_p12 = scmp.lt.s32.totalorder %s44_s25, %s44_s25 }
  0x1d   :  { %p1486_p11 = scmp.ne.s32.totalorder %s44_s25, %s1485_s13  ;;  %p1491_p13 = scmp.lt.s32.totalorder %s1485_s13, %s1485_s13 }
  0x1f   :  { %p1492_p0 = por %p1491_p13, %p1490_p12 }
  0x21   :  { %p1493_p1 = pnand %p1492_p0, %p1486_p11 }
  0x23   :  { %1496 = shalt.err (!%p1493_p1)
}
  0x24   :  { %s1505_s3 = smov 128   ;;  %s1506_s12 = smov 8  }
  0x25   :  { %49 = dma.hbm_to_vmem [thread:$0]  %s1641_s5, 8192, %s44_s25, [#allocation6], %s1505_s3, %s1505_s3, %s1506_s12  }
  0x26   :  { %1497 = dma.done.wait [#allocation4], 8192  }
  0x27   :  { %1498 = vsyncadd [#allocation4], 4294959104 }
  0x28   :  { %1499 = dma.done.wait [#allocation6], 8192  }
  0x29   :  { %1500 = vsyncadd [#allocation6], 4294959104  ;;  %v1507_v1 = vmov 0   ;;  %v62_v2 = vld [vmem:[%s1636_s0] sm:$0xff]  ;;  %v1358_v39 = vld [vmem:[#allocation5 + $0x10] ss:$8 sps:$4 sm:$0xff]   ;;  %v70_v57 = vlaneseq }
  0x2a   :  { %1256 = vset.pattern.permute.xlu0 %v1507_v1  ;;  %v1257_v3 = vld [vmem:[#allocation3 + $0x4] ss:$16 sps:$4 sm:$0xff]   ;;  %v1259_v4 = vld [vmem:[#allocation3] ss:$16 sps:$4 sm:$0xff]   ;;  %v1307_v35 = vld [vmem:[#allocation3 + $0xc] ss:$16 sps:$4 sm:$0xff]  }
  0x2b   :  { %66 = vperm.xlu0 %1256, %v62_v2   ;;  %v1260_v5 = vld [vmem:[#allocation3 + $0x24] ss:$16 sps:$4 sm:$0xff]   ;;  %506 = vmatprep.subr.bf16.mxu1 %v1257_v3  ;;  %v1262_v6 = vld [vmem:[#allocation3 + $0x20] ss:$16 sps:$4 sm:$0xff]   ;;  %v1588_v60 = vshrl.u32 %v70_v57, 7  ;;  %vm1106_vm0 = vcmask 7168  }
  0x2c   :  { %507 = vmatpush1.bf16.msra.mxu1 %v1259_v4  ;;  %v1263_v7 = vld [vmem:[#allocation3 + $0x44] ss:$16 sps:$4 sm:$0xff]   ;;  %v1265_v8 = vld [vmem:[#allocation3 + $0x40] ss:$16 sps:$4 sm:$0xff]  }
  0x2d   :  { %508 = vmatprep.subr.bf16.mxu1 %v1260_v5  ;;  %v1266_v9 = vld [vmem:[#allocation3 + $0x64] ss:$16 sps:$4 sm:$0xff]   ;;  %v1268_v10 = vld [vmem:[#allocation3 + $0x60] ss:$16 sps:$4 sm:$0xff]   ;;  %v1591_v63 = vsub.s32 0, %v1588_v60  ;;  %v1594_v0 = vsub.s32 1, %v1588_v60 }
  0x2e   :  { %v1269_v11 = vld [vmem:[#allocation3 + $0x84] ss:$16 sps:$4 sm:$0xff]   ;;  %v1271_v12 = vld [vmem:[#allocation3 + $0x80] ss:$16 sps:$4 sm:$0xff]  }
  0x2f   :  { %v1272_v13 = vld [vmem:[#allocation3 + $0xa4] ss:$16 sps:$4 sm:$0xff]   ;;  %v1274_v14 = vld [vmem:[#allocation3 + $0xa0] ss:$16 sps:$4 sm:$0xff]  }
  0x30   :  { %509 = vmatpush1.bf16.msra.mxu1 %v1262_v6  ;;  %v1275_v15 = vld [vmem:[#allocation3 + $0xc4] ss:$16 sps:$4 sm:$0xff]   ;;  %v1277_v16 = vld [vmem:[#allocation3 + $0xc0] ss:$16 sps:$4 sm:$0xff]  }
  0x31   :  { %510 = vmatprep.subr.bf16.mxu1 %v1263_v7  ;;  %v1278_v17 = vld [vmem:[#allocation3 + $0xe4] ss:$16 sps:$4 sm:$0xff]   ;;  %v1280_v18 = vld [vmem:[#allocation3 + $0xe0] ss:$16 sps:$4 sm:$0xff]  }
  0x32   :  { %v1281_v19 = vld [vmem:[#allocation3 + $0x104] ss:$16 sps:$4 sm:$0xff]   ;;  %v1283_v20 = vld [vmem:[#allocation3 + $0x100] ss:$16 sps:$4 sm:$0xff]  }
  0x33   :  { %v1284_v21 = vld [vmem:[#allocation3 + $0x124] ss:$16 sps:$4 sm:$0xff]   ;;  %v1286_v22 = vld [vmem:[#allocation3 + $0x120] ss:$16 sps:$4 sm:$0xff]  }
  0x34   :  { %511 = vmatpush1.bf16.msra.mxu1 %v1265_v8  ;;  %v1287_v23 = vld [vmem:[#allocation3 + $0x144] ss:$16 sps:$4 sm:$0xff]   ;;  %v1289_v24 = vld [vmem:[#allocation3 + $0x140] ss:$16 sps:$4 sm:$0xff]  }
  0x35   :  { %512 = vmatprep.subr.bf16.mxu1 %v1266_v9  ;;  %v1290_v25 = vld [vmem:[#allocation3 + $0x164] ss:$16 sps:$4 sm:$0xff]   ;;  %v1292_v26 = vld [vmem:[#allocation3 + $0x160] ss:$16 sps:$4 sm:$0xff]  }
  0x36   :  { %v1293_v27 = vld [vmem:[#allocation3 + $0x184] ss:$16 sps:$4 sm:$0xff]   ;;  %v1295_v28 = vld [vmem:[#allocation3 + $0x180] ss:$16 sps:$4 sm:$0xff]  }
  0x37   :  { %v1296_v29 = vld [vmem:[#allocation3 + $0x1a4] ss:$16 sps:$4 sm:$0xff]   ;;  %v1298_v30 = vld [vmem:[#allocation3 + $0x1a0] ss:$16 sps:$4 sm:$0xff]  }
  0x38   :  { %513 = vmatpush1.bf16.msra.mxu1 %v1268_v10  ;;  %v1299_v31 = vld [vmem:[#allocation3 + $0x1c4] ss:$16 sps:$4 sm:$0xff]   ;;  %v1301_v32 = vld [vmem:[#allocation3 + $0x1c0] ss:$16 sps:$4 sm:$0xff]  }
  0x39   :  { %514 = vmatprep.subr.bf16.mxu1 %v1269_v11  ;;  %v1302_v33 = vld [vmem:[#allocation3 + $0x1e4] ss:$16 sps:$4 sm:$0xff]   ;;  %v1304_v34 = vld [vmem:[#allocation3 + $0x1e0] ss:$16 sps:$4 sm:$0xff]  }
  0x3a   :  { %v1353_v36 = vld [vmem:[#allocation5 + $0x4] ss:$8 sps:$4 sm:$0xff]   ;;  %v1355_v37 = vld [vmem:[#allocation5] ss:$8 sps:$4 sm:$0xff]   ;;  %v1356_v38 = vld [vmem:[#allocation5 + $0x14] ss:$8 sps:$4 sm:$0xff]  }
  0x3b   :  { %992 = vmatprep.subr.bf16.mxu0 %v1353_v36  ;;  %v1359_v40 = vld [vmem:[#allocation5 + $0x24] ss:$8 sps:$4 sm:$0xff]   ;;  %v1361_v41 = vld [vmem:[#allocation5 + $0x20] ss:$8 sps:$4 sm:$0xff]   ;;  %v1362_v42 = vld [vmem:[#allocation5 + $0x34] ss:$8 sps:$4 sm:$0xff]  }
  0x3c   :  { %515 = vmatpush1.bf16.msra.mxu1 %v1271_v12  ;;  %993 = vmatpush1.bf16.msra.mxu0 %v1355_v37  ;;  %v1364_v43 = vld [vmem:[#allocation5 + $0x30] ss:$8 sps:$4 sm:$0xff]   ;;  %v1365_v44 = vld [vmem:[#allocation5 + $0x44] ss:$8 sps:$4 sm:$0xff]   ;;  %v1367_v45 = vld [vmem:[#allocation5 + $0x40] ss:$8 sps:$4 sm:$0xff]  }
  0x3d   :  { %516 = vmatprep.subr.bf16.mxu1 %v1272_v13  ;;  %994 = vmatprep.subr.bf16.mxu0 %v1356_v38  ;;  %v1368_v46 = vld [vmem:[#allocation5 + $0x54] ss:$8 sps:$4 sm:$0xff]   ;;  %v1370_v47 = vld [vmem:[#allocation5 + $0x50] ss:$8 sps:$4 sm:$0xff]   ;;  %v1371_v48 = vld [vmem:[#allocation5 + $0x64] ss:$8 sps:$4 sm:$0xff]  }
  0x3e   :  { %v1373_v49 = vld [vmem:[#allocation5 + $0x60] ss:$8 sps:$4 sm:$0xff]   ;;  %v1374_v50 = vld [vmem:[#allocation5 + $0x74] ss:$8 sps:$4 sm:$0xff]   ;;  %v1376_v51 = vld [vmem:[#allocation5 + $0x70] ss:$8 sps:$4 sm:$0xff]  }
  0x3f   :  { %v1377_v52 = vld [vmem:[#allocation5 + $0x84] ss:$8 sps:$4 sm:$0xff]   ;;  %v1379_v53 = vld [vmem:[#allocation5 + $0x80] ss:$8 sps:$4 sm:$0xff]   ;;  %v1380_v54 = vld [vmem:[#allocation5 + $0x94] ss:$8 sps:$4 sm:$0xff]  }
  0x40   :  { %517 = vmatpush1.bf16.msra.mxu1 %v1274_v14  ;;  %995 = vmatpush1.bf16.msra.mxu0 %v1358_v39  ;;  %v1382_v55 = vld [vmem:[#allocation5 + $0x90] ss:$8 sps:$4 sm:$0xff]   ;;  %v1383_v56 = vld [vmem:[#allocation5 + $0xa4] ss:$8 sps:$4 sm:$0xff]   ;;  %v1385_v58 = vld [vmem:[#allocation5 + $0xa0] ss:$8 sps:$4 sm:$0xff]  }
  0x41   :  { %518 = vmatprep.subr.bf16.mxu1 %v1275_v15  ;;  %996 = vmatprep.subr.bf16.mxu0 %v1359_v40  ;;  %v1386_v59 = vld [vmem:[#allocation5 + $0xb4] ss:$8 sps:$4 sm:$0xff]   ;;  %v1388_v61 = vld [vmem:[#allocation5 + $0xb0] ss:$8 sps:$4 sm:$0xff]   ;;  %v1389_v62 = vld [vmem:[#allocation5 + $0xc4] ss:$8 sps:$4 sm:$0xff]  }
  0x42   :  { %v1391_v1 = vld [vmem:[#allocation5 + $0xc0] ss:$8 sps:$4 sm:$0xff]   ;;  %v1392_v3 = vld [vmem:[#allocation5 + $0xd4] ss:$8 sps:$4 sm:$0xff]   ;;  %v1394_v7 = vld [vmem:[#allocation5 + $0xd0] ss:$8 sps:$4 sm:$0xff]  }
  0x43   :  { %v63_v2 = vld [vmem:[%s1637_s1] sm:$0x3]  ;;  %v1332_v37 = vld [vmem:[#allocation3 + $0x128] ss:$16 sps:$4 sm:$0xff]  }
  0x44   :  { %519 = vmatpush1.bf16.msra.mxu1 %v1277_v16  ;;  %997 = vmatpush1.bf16.msra.mxu0 %v1361_v41  ;;  %v82_v4 = vld [vmem:[%s1638_s2] sm:$0x3]  ;;  %v73_v5 = vrot.slane %v63_v2, %v1591_v63  ;;  %v77_v6 = vrot.slane %v63_v2, %v1594_v0  ;;  %v1335_v39 = vld [vmem:[#allocation3 + $0x148] ss:$16 sps:$4 sm:$0xff]  }
  0x45   :  { %520 = vmatprep.subr.bf16.mxu1 %v1278_v17  ;;  %998 = vmatprep.subr.bf16.mxu0 %v1362_v42  ;;  %v87_v8 = vrot.slane %v82_v4, %v1591_v63  ;;  %v91_v9 = vrot.slane %v82_v4, %v1594_v0  ;;  %v1334_v36 = vld [vmem:[#allocation3 + $0x12c] ss:$16 sps:$4 sm:$0xff]   ;;  %v1338_v41 = vld [vmem:[#allocation3 + $0x168] ss:$16 sps:$4 sm:$0xff]  }
  0x46   :  { %v1337_v38 = vld [vmem:[#allocation3 + $0x14c] ss:$16 sps:$4 sm:$0xff]  }
  0x47   :  { %v1340_v40 = vld [vmem:[#allocation3 + $0x16c] ss:$16 sps:$4 sm:$0xff]  }
  0x48   :  { %521 = vmatpush1.bf16.msra.mxu1 %v1280_v18  ;;  %999 = vmatpush1.bf16.msra.mxu0 %v1364_v43  ;;  %v1305_v18 = vld [vmem:[#allocation3 + $0x8] ss:$16 sps:$4 sm:$0xff]   ;;  %v1343_v42 = vld [vmem:[#allocation3 + $0x18c] ss:$16 sps:$4 sm:$0xff]  }
  0x49   :  { %522 = vmatprep.subr.bf16.mxu1 %v1281_v19  ;;  %1000 = vmatprep.subr.bf16.mxu0 %v1365_v44  ;;  %v1341_v43 = vld [vmem:[#allocation3 + $0x188] ss:$16 sps:$4 sm:$0xff]   ;;  %v1346_v44 = vld [vmem:[#allocation3 + $0x1ac] ss:$16 sps:$4 sm:$0xff]  }
  0x4c   :  { %523 = vmatpush1.bf16.msra.mxu1 %v1283_v20  ;;  %1001 = vmatpush1.bf16.msra.mxu0 %v1367_v45  ;;  %v1310_v20 = vld [vmem:[#allocation3 + $0x2c] ss:$16 sps:$4 sm:$0xff]   ;;  %v1344_v45 = vld [vmem:[#allocation3 + $0x1a8] ss:$16 sps:$4 sm:$0xff]  }
  0x4d   :  { %524 = vmatprep.subr.bf16.mxu1 %v1284_v21  ;;  %1002 = vmatprep.subr.bf16.mxu0 %v1368_v46  ;;  %v1308_v21 = vld [vmem:[#allocation3 + $0x28] ss:$16 sps:$4 sm:$0xff]   ;;  %v1349_v46 = vld [vmem:[#allocation3 + $0x1cc] ss:$16 sps:$4 sm:$0xff]  }
  0x50   :  { %525 = vmatpush1.bf16.msra.mxu1 %v1286_v22  ;;  %1003 = vmatpush1.bf16.msra.mxu0 %v1370_v47  ;;  %v1313_v22 = vld [vmem:[#allocation3 + $0x4c] ss:$16 sps:$4 sm:$0xff]   ;;  %v1347_v47 = vld [vmem:[#allocation3 + $0x1c8] ss:$16 sps:$4 sm:$0xff]  }
  0x51   :  { %526 = vmatprep.subr.bf16.mxu1 %v1287_v23  ;;  %1004 = vmatprep.subr.bf16.mxu0 %v1371_v48  ;;  %v1311_v23 = vld [vmem:[#allocation3 + $0x48] ss:$16 sps:$4 sm:$0xff]   ;;  %v1352_v48 = vld [vmem:[#allocation3 + $0x1ec] ss:$16 sps:$4 sm:$0xff]  }
  0x54   :  { %527 = vmatpush1.bf16.msra.mxu1 %v1289_v24  ;;  %1005 = vmatpush1.bf16.msra.mxu0 %v1373_v49  ;;  %v1316_v24 = vld [vmem:[#allocation3 + $0x6c] ss:$16 sps:$4 sm:$0xff]   ;;  %v1350_v49 = vld [vmem:[#allocation3 + $0x1e8] ss:$16 sps:$4 sm:$0xff]  }
  0x55   :  { %528 = vmatprep.subr.bf16.mxu1 %v1290_v25  ;;  %1006 = vmatprep.subr.bf16.mxu0 %v1374_v50  ;;  %v1314_v25 = vld [vmem:[#allocation3 + $0x68] ss:$16 sps:$4 sm:$0xff]   ;;  %v1395_v50 = vld [vmem:[#allocation5 + $0xe4] ss:$8 sps:$4 sm:$0xff]  }
  0x58   :  { %529 = vmatpush1.bf16.msra.mxu1 %v1292_v26  ;;  %1007 = vmatpush1.bf16.msra.mxu0 %v1376_v51  ;;  %v1319_v26 = vld [vmem:[#allocation3 + $0x8c] ss:$16 sps:$4 sm:$0xff]   ;;  %v1397_v51 = vld [vmem:[#allocation5 + $0xe0] ss:$8 sps:$4 sm:$0xff]  }
  0x59   :  { %530 = vmatprep.subr.bf16.mxu1 %v1293_v27  ;;  %1008 = vmatprep.subr.bf16.mxu0 %v1377_v52  ;;  %v1317_v27 = vld [vmem:[#allocation3 + $0x88] ss:$16 sps:$4 sm:$0xff]   ;;  %v1398_v52 = vld [vmem:[#allocation5 + $0xf4] ss:$8 sps:$4 sm:$0xff]  }
  0x5c   :  { %531 = vmatpush1.bf16.msra.mxu1 %v1295_v28  ;;  %1009 = vmatpush1.bf16.msra.mxu0 %v1379_v53  ;;  %v1322_v28 = vld [vmem:[#allocation3 + $0xac] ss:$16 sps:$4 sm:$0xff]   ;;  %v1400_v53 = vld [vmem:[#allocation5 + $0xf0] ss:$8 sps:$4 sm:$0xff]  }
  0x5d   :  { %532 = vmatprep.subr.bf16.mxu1 %v1296_v29  ;;  %1010 = vmatprep.subr.bf16.mxu0 %v1380_v54  ;;  %v1320_v29 = vld [vmem:[#allocation3 + $0xa8] ss:$16 sps:$4 sm:$0xff]   ;;  %v1403_v54 = vld [vmem:[#allocation5 + $0x104] ss:$8 sps:$4 sm:$0xff]  }
  0x60   :  { %533 = vmatpush1.bf16.msra.mxu1 %v1298_v30  ;;  %1011 = vmatpush1.bf16.msra.mxu0 %v1382_v55  ;;  %v1325_v30 = vld [vmem:[#allocation3 + $0xcc] ss:$16 sps:$4 sm:$0xff]  }
  0x61   :  { %534 = vmatprep.subr.bf16.mxu1 %v1299_v31  ;;  %1012 = vmatprep.subr.bf16.mxu0 %v1383_v56  ;;  %v1323_v31 = vld [vmem:[#allocation3 + $0xc8] ss:$16 sps:$4 sm:$0xff]   ;;  %v1613_v55 = vld [vmem:[%s1640_s4] sm:$0xf] }
  0x62   :  { %v169_v56 = vrot.slane %v1613_v55, %v1591_v63  ;;  %v173_v57 = vrot.slane %v1613_v55, %v1594_v0 }
  0x64   :  { %535 = vmatpush1.bf16.msra.mxu1 %v1301_v32  ;;  %1013 = vmatpush1.bf16.msra.mxu0 %v1385_v58  ;;  %v1328_v32 = vld [vmem:[#allocation3 + $0xec] ss:$16 sps:$4 sm:$0xff]  }
  0x65   :  { %536 = vmatprep.subr.bf16.mxu1 %v1302_v33  ;;  %1014 = vmatprep.subr.bf16.mxu0 %v1386_v59  ;;  %v1326_v33 = vld [vmem:[#allocation3 + $0xe8] ss:$16 sps:$4 sm:$0xff]  }
  0x68   :  { %537 = vmatpush1.bf16.msra.mxu1 %v1304_v34  ;;  %1015 = vmatpush1.bf16.msra.mxu0 %v1388_v61  ;;  %v1331_v34 = vld [vmem:[#allocation3 + $0x10c] ss:$16 sps:$4 sm:$0xff]  }
  0x69   :  { %547 = vmatprep.subr.bf16.mxu1 %v1307_v35  ;;  %1016 = vmatprep.subr.bf16.mxu0 %v1389_v62  ;;  %v1329_v35 = vld [vmem:[#allocation3 + $0x108] ss:$16 sps:$4 sm:$0xff]  }
  0x6c   :  { %1017 = vmatpush1.bf16.msra.mxu0 %v1391_v1 }
  0x6d   :  { %1018 = vmatprep.subr.bf16.mxu0 %v1392_v3 }
  0x70   :  { %1019 = vmatpush1.bf16.msra.mxu0 %v1394_v7 }
  0x71   :  { %1020 = vmatprep.subr.bf16.mxu0 %v1395_v50 }
  0x74   :  { %1021 = vmatpush1.bf16.msra.mxu0 %v1397_v51  ;;  %v660_v51 = vld [vmem:[%s1642_s6] sm:$0x3] }
  0x75   :  { %1022 = vmatprep.subr.bf16.mxu0 %v1398_v52  ;;  %v665_v52 = vrot.slane %v660_v51, %v1591_v63 }
  0x78   :  { %1023 = vmatpush1.bf16.msra.mxu0 %v1400_v53  ;;  %v1076_v53 = vld [vmem:[%s1643_s7] sm:$0x3] }
  0x79   :  { %1033 = vmatprep.subr.bf16.mxu0 %v1403_v54  ;;  %v669_v54 = vrot.slane %v660_v51, %v1594_v0 }
  0xaa   :  { %v67_v10 = vpop.permute.xlu0 %66 }
  0xab   :  { %v80_v11 = vmul.f32 %v73_v5, %v67_v10  ;;  %v81_v12 = vmul.f32 %v77_v6, %v67_v10  ;;  %v1401_v6 = vld [vmem:[#allocation5 + $0x100] ss:$8 sps:$4 sm:$0xff]   ;;  %v1409_v10 = vld [vmem:[#allocation5 + $0x124] ss:$8 sps:$4 sm:$0xff]  }
  0xad   :  { %v94_v13 = vadd.f32 %v87_v8, %v80_v11  ;;  %v95_v14 = vadd.f32 %v91_v9, %v81_v12  ;;  %v1406_v8 = vld [vmem:[#allocation5 + $0x114] ss:$8 sps:$4 sm:$0xff]   ;;  %v1404_v9 = vld [vmem:[#allocation5 + $0x110] ss:$8 sps:$4 sm:$0xff]   ;;  %v1407_v11 = vld [vmem:[#allocation5 + $0x120] ss:$8 sps:$4 sm:$0xff]  }
  0xae   :  { %v1412_v12 = vld [vmem:[#allocation5 + $0x134] ss:$8 sps:$4 sm:$0xff]  }
  0xaf   :  { %v96_v15 = vmax.f32 %v94_v13, 0.0  ;;  %v97_v16 = vmax.f32 %v95_v14, 0.0  ;;  %v1410_v13 = vld [vmem:[#allocation5 + $0x130] ss:$8 sps:$4 sm:$0xff]   ;;  %v1415_v14 = vld [vmem:[#allocation5 + $0x144] ss:$8 sps:$4 sm:$0xff]  }
  0xb1   :  { %v99_v17 = vpack.c.bf16 %v97_v16, %v97_v16  ;;  %v1606_v19 = vpack.c.bf16 %v96_v15, %v96_v15  ;;  %v1413_v15 = vld [vmem:[#allocation5 + $0x140] ss:$8 sps:$4 sm:$0xff]   ;;  %v1418_v16 = vld [vmem:[#allocation5 + $0x154] ss:$8 sps:$4 sm:$0xff]  }
  0xb3   :  { %538 = vmatprep.mubr.bf16.mxu1 %v99_v17 }
  0xb4   :  { %539 = vmatmul.mubr.bf16.vlgmr.msra.gmra.mrb[0].mxu1 %v1606_v19 }
  0xb5   :  { %548 = vmatpush1.bf16.msra.mxu1 %v1305_v18  ;;  %579 = vmatprep.mubr.bf16.mxu1 %v99_v17  ;;  %v1416_v17 = vld [vmem:[#allocation5 + $0x150] ss:$8 sps:$4 sm:$0xff]   ;;  %v1421_v18 = vld [vmem:[#allocation5 + $0x164] ss:$8 sps:$4 sm:$0xff]  }
  0xb6   :  { %549 = vmatprep.subr.bf16.mxu1 %v1310_v20  ;;  %v1424_v20 = vld [vmem:[#allocation5 + $0x174] ss:$8 sps:$4 sm:$0xff]  }
  0xb9   :  { %550 = vmatpush1.bf16.msra.mxu1 %v1308_v21  ;;  %v1422_v21 = vld [vmem:[#allocation5 + $0x170] ss:$8 sps:$4 sm:$0xff]  }
  0xba   :  { %551 = vmatprep.subr.bf16.mxu1 %v1313_v22  ;;  %v1427_v22 = vld [vmem:[#allocation5 + $0x184] ss:$8 sps:$4 sm:$0xff]  }
  0xbd   :  { %552 = vmatpush1.bf16.msra.mxu1 %v1311_v23  ;;  %v1425_v23 = vld [vmem:[#allocation5 + $0x180] ss:$8 sps:$4 sm:$0xff]  }
  0xbe   :  { %553 = vmatprep.subr.bf16.mxu1 %v1316_v24  ;;  %v1430_v24 = vld [vmem:[#allocation5 + $0x194] ss:$8 sps:$4 sm:$0xff]  }
  0xc1   :  { %554 = vmatpush1.bf16.msra.mxu1 %v1314_v25  ;;  %v1428_v25 = vld [vmem:[#allocation5 + $0x190] ss:$8 sps:$4 sm:$0xff]  }
  0xc2   :  { %555 = vmatprep.subr.bf16.mxu1 %v1319_v26  ;;  %v1433_v26 = vld [vmem:[#allocation5 + $0x1a4] ss:$8 sps:$4 sm:$0xff]  }
  0xc5   :  { %556 = vmatpush1.bf16.msra.mxu1 %v1317_v27  ;;  %v1431_v27 = vld [vmem:[#allocation5 + $0x1a0] ss:$8 sps:$4 sm:$0xff]  }
  0xc6   :  { %557 = vmatprep.subr.bf16.mxu1 %v1322_v28  ;;  %v1436_v28 = vld [vmem:[#allocation5 + $0x1b4] ss:$8 sps:$4 sm:$0xff]  }
  0xc9   :  { %558 = vmatpush1.bf16.msra.mxu1 %v1320_v29  ;;  %v1434_v29 = vld [vmem:[#allocation5 + $0x1b0] ss:$8 sps:$4 sm:$0xff]  }
  0xca   :  { %559 = vmatprep.subr.bf16.mxu1 %v1325_v30  ;;  %v1439_v30 = vld [vmem:[#allocation5 + $0x1c4] ss:$8 sps:$4 sm:$0xff]  }
  0xcd   :  { %560 = vmatpush1.bf16.msra.mxu1 %v1323_v31  ;;  %v1437_v31 = vld [vmem:[#allocation5 + $0x1c0] ss:$8 sps:$4 sm:$0xff]  }
  0xce   :  { %561 = vmatprep.subr.bf16.mxu1 %v1328_v32  ;;  %v1442_v32 = vld [vmem:[#allocation5 + $0x1d4] ss:$8 sps:$4 sm:$0xff]  }
  0xd1   :  { %562 = vmatpush1.bf16.msra.mxu1 %v1326_v33  ;;  %v176_v33 = vsub.s32 2, %v1588_v60 }
  0xd2   :  { %563 = vmatprep.subr.bf16.mxu1 %v1331_v34  ;;  %v1440_v34 = vld [vmem:[#allocation5 + $0x1d0] ss:$8 sps:$4 sm:$0xff]  }
  0xd5   :  { %564 = vmatpush1.bf16.msra.mxu1 %v1329_v35  ;;  %v180_v35 = vsub.s32 3, %v1588_v60 }
  0xd6   :  { %565 = vmatprep.subr.bf16.mxu1 %v1334_v36  ;;  %v1445_v36 = vld [vmem:[#allocation5 + $0x1e4] ss:$8 sps:$4 sm:$0xff]  }
  0xd9   :  { %566 = vmatpush1.bf16.msra.mxu1 %v1332_v37  ;;  %v177_v37 = vrot.slane %v1613_v55, %v176_v33 }
  0xda   :  { %567 = vmatprep.subr.bf16.mxu1 %v1337_v38  ;;  %v181_v38 = vrot.slane %v1613_v55, %v180_v35 }
  0xdd   :  { %568 = vmatpush1.bf16.msra.mxu1 %v1335_v39  ;;  %v1443_v39 = vld [vmem:[#allocation5 + $0x1e0] ss:$8 sps:$4 sm:$0xff]  }
  0xde   :  { %569 = vmatprep.subr.bf16.mxu1 %v1340_v40  ;;  %v1448_v40 = vld [vmem:[#allocation5 + $0x1f4] ss:$8 sps:$4 sm:$0xff]  }
  0xe1   :  { %570 = vmatpush1.bf16.msra.mxu1 %v1338_v41 }
  0xe2   :  { %571 = vmatprep.subr.bf16.mxu1 %v1343_v42 }
  0xe5   :  { %572 = vmatpush1.bf16.msra.mxu1 %v1341_v43 }
  0xe6   :  { %573 = vmatprep.subr.bf16.mxu1 %v1346_v44 }
  0xe9   :  { %574 = vmatpush1.bf16.msra.mxu1 %v1344_v45 }
  0xea   :  { %575 = vmatprep.subr.bf16.mxu1 %v1349_v46  ;;  %v1446_v46 = vld [vmem:[#allocation5 + $0x1f0] ss:$8 sps:$4 sm:$0xff]  }
  0xed   :  { %576 = vmatpush1.bf16.msra.mxu1 %v1347_v47 }
  0xee   :  { %577 = vmatprep.subr.bf16.mxu1 %v1352_v48 }
  0xf1   :  { %578 = vmatpush1.bf16.msra.mxu1 %v1350_v49 }
  0xf4   :  { %580 = vmatmul.mubr.bf16.vlgmr.msra.gmra.mrb[4].mxu1 %v1606_v19  ;;  %v1419_v19 = vld [vmem:[#allocation5 + $0x160] ss:$8 sps:$4 sm:$0xff]  }
 0x187   :  { %v540_v58 = vpop.f32.mrb[0].mxu1 }
 0x188   :  { %v541_v59 = vadd.f32 %v540_v58, %v169_v56  ;;  %v542_v61 = vpop.f32.mrb[1].mxu1 }
 0x189   :  { %v543_v62 = vadd.f32 %v542_v61, %v173_v57  ;;  %v544_v1 = vpop.f32.mrb[2].mxu1  ;;  %v1081_v57 = vrot.slane %v1076_v53, %v1591_v63  ;;  %v1085_v61 = vrot.slane %v1076_v53, %v1594_v0 }
 0x18a   :  { %v588_v2 = vmax.f32 %v541_v59, 0.0  ;;  %v545_v3 = vpop.f32.mrb[3].mxu1 }
 0x18b   :  { %v589_v4 = vmax.f32 %v543_v62, 0.0 }
 0x18c   :  { %v592_v7 = vpack.c.bf16 %v588_v2, %v588_v2 }
 0x18d   :  { %v593_v5 = vpack.c.bf16 %v589_v4, %v589_v4 }
 0x18f   :  { %1024 = vmatprep.mubr.bf16.mxu0 %v593_v5 }
 0x190   :  { %1025 = vmatmul.mubr.bf16.vlgmr.msra.gmra.mrb[0].mxu0 %v592_v7  ;;  %v1242_v7 = vld [vmem:[#allocation2] ss:$0 sm:$0xff] }
 0x191   :  { %1034 = vmatpush1.bf16.msra.mxu0 %v1401_v6 }
 0x192   :  { %1035 = vmatprep.subr.bf16.mxu0 %v1406_v8 }
 0x195   :  { %1036 = vmatpush1.bf16.msra.mxu0 %v1404_v9 }
 0x196   :  { %1037 = vmatprep.subr.bf16.mxu0 %v1409_v10 }
 0x199   :  { %1038 = vmatpush1.bf16.msra.mxu0 %v1407_v11 }
 0x19a   :  { %1039 = vmatprep.subr.bf16.mxu0 %v1412_v12 }
 0x19d   :  { %1040 = vmatpush1.bf16.msra.mxu0 %v1410_v13 }
 0x19e   :  { %1041 = vmatprep.subr.bf16.mxu0 %v1415_v14 }
 0x1a1   :  { %1042 = vmatpush1.bf16.msra.mxu0 %v1413_v15 }
 0x1a2   :  { %1043 = vmatprep.subr.bf16.mxu0 %v1418_v16 }
 0x1a5   :  { %1044 = vmatpush1.bf16.msra.mxu0 %v1416_v17 }
 0x1a6   :  { %1045 = vmatprep.subr.bf16.mxu0 %v1421_v18 }
 0x1a9   :  { %1046 = vmatpush1.bf16.msra.mxu0 %v1419_v19 }
 0x1aa   :  { %1047 = vmatprep.subr.bf16.mxu0 %v1424_v20 }
 0x1ad   :  { %1048 = vmatpush1.bf16.msra.mxu0 %v1422_v21 }
 0x1ae   :  { %1049 = vmatprep.subr.bf16.mxu0 %v1427_v22 }
 0x1b1   :  { %1050 = vmatpush1.bf16.msra.mxu0 %v1425_v23 }
 0x1b2   :  { %1051 = vmatprep.subr.bf16.mxu0 %v1430_v24 }
 0x1b5   :  { %1052 = vmatpush1.bf16.msra.mxu0 %v1428_v25 }
 0x1b6   :  { %1053 = vmatprep.subr.bf16.mxu0 %v1433_v26 }
 0x1b9   :  { %1054 = vmatpush1.bf16.msra.mxu0 %v1431_v27 }
 0x1ba   :  { %1055 = vmatprep.subr.bf16.mxu0 %v1436_v28 }
 0x1bd   :  { %1056 = vmatpush1.bf16.msra.mxu0 %v1434_v29 }
 0x1be   :  { %1057 = vmatprep.subr.bf16.mxu0 %v1439_v30 }
 0x1c1   :  { %1058 = vmatpush1.bf16.msra.mxu0 %v1437_v31 }
 0x1c2   :  { %1059 = vmatprep.subr.bf16.mxu0 %v1442_v32 }
 0x1c5   :  { %1060 = vmatpush1.bf16.msra.mxu0 %v1440_v34 }
 0x1c6   :  { %1061 = vmatprep.subr.bf16.mxu0 %v1445_v36 }
 0x1c7   :  { %v581_v41 = vpop.f32.mrb[4].mxu1 }
 0x1c8   :  { %v582_v42 = vadd.f32 %v581_v41, %v177_v37  ;;  %v583_v43 = vpop.f32.mrb[5].mxu1 }
 0x1c9   :  { %v584_v44 = vadd.f32 %v583_v43, %v181_v38  ;;  %v585_v45 = vpop.f32.mrb[6].mxu1  ;;  %1062 = vmatpush1.bf16.msra.mxu0 %v1443_v39 }
 0x1ca   :  { %v590_v47 = vmax.f32 %v582_v42, 0.0  ;;  %v586_v48 = vpop.f32.mrb[7].mxu1  ;;  %1063 = vmatprep.subr.bf16.mxu0 %v1448_v40 }
 0x1cb   :  { %v591_v60 = vmax.f32 %v584_v44, 0.0 }
 0x1cc   :  { %v594_v50 = vpack.c.bf16 %v590_v47, %v590_v47 }
 0x1cd   :  { %v595_v49 = vpack.c.bf16 %v591_v60, %v591_v60  ;;  %1064 = vmatpush1.bf16.msra.mxu0 %v1446_v46 }
 0x1cf   :  { %1065 = vmatprep.mubr.bf16.mxu0 %v595_v49 }
 0x1d0   :  { %1066 = vmatmul.mubr.bf16.vlgmr.msra.gmra.mrb[0].mxu0 %v594_v50 }
 0x2a3   :  { %v1067_v55 = vpop.f32.mrb[0].mxu0 }
 0x2a4   :  { %v1243_v56 = vadd.f32 %v1067_v55, %v665_v52  ;;  %v1069_v58 = vpop.f32.mrb[1].mxu0 }
 0x2a5   :  { %v1244_v59 = vadd.f32 %v1069_v58, %v669_v54  ;;  %v1071_v62 = vpop.f32.mrb[2].mxu0 }
 0x2a6   :  { %v1074_v1 = vmax.f32 %v1243_v56, 0.0  ;;  %v1072_v2 = vpop.f32.mrb[3].mxu0 }
 0x2a7   :  { %v1075_v3 = vmax.f32 %v1244_v59, 0.0 }
 0x2a8   :  { %v1088_v4 = vmul.f32 %v1081_v57, %v1074_v1 }
 0x2a9   :  { %v1089_v5 = vmul.f32 %v1085_v61, %v1075_v3 }
 0x2ab   :  { %v1090_v6 = vadd.f32 %v1089_v5, %v1088_v4 }
 0x2ad   :  { %1091 = vadd.xlane.f32.xlu0 %v1090_v6 }
 0x33a   :  { %v1092_v8 = vpop.xlane.xlu0 %1091 }
 0x33b   :  { %v1100_v9 = vadd.f32 %v1242_v7, %v1092_v8 }
 0x33d   :  { %v1101_v10 = vsub.f32 0.0, %v1100_v9 }
 0x33f   :  { %v1102_v11 = vmul.f32 1.442695, %v1101_v10 }
 0x341   :  { %1449 = vpow2.f32 %v1102_v11 }
 0x34b   :  { %v1450_v12 = vpop.eup %1449 }
 0x34c   :  { %v1104_v63 = vadd.f32 1.0, %v1450_v12 }
 0x34e   :  { %1451 = vrcp.f32 %v1104_v63 }
 0x358   :  { %v1452_v13 = vpop.eup %1451 }
 0x359   :  { %1107 = vst.msk [vmem:[%s1645_s9] sm:$0xff] %vm1106_vm0, %v1452_v13 }
 0x35a   :  { %1112 = vsyncpa [#allocation4], 1 }
 0x35b   :  { %1113 = vsyncpa [#allocation6], 1 }

</bundles_post_ra>
